<compile_context>
chip_gen: v5e
topology: v5e:2x2
jax: 0.10.0
libtpu: 0.0.40
codegen_flags: <defaults>
</compile_context>

<pallas_src>
import jax
import jax.numpy as jnp
from jax import lax
from jax.experimental import pallas as pl
from jax.experimental.pallas import tpu as pltpu


def cbow_kernel(ctx_ref, emb_ref, w_ref, b_ref, out_ref, avg_sc):
    """One vocab tile of the CBOW forward.

    ctx_ref : SMEM (B, W) int32        context word ids (scalar prefetch)
    emb_ref : VMEM (V, E) f32          embedding table (resident across grid)
    w_ref   : VMEM (TN, E) f32         fc weight tile (rows of nn.Linear weight)
    b_ref   : VMEM (1, TN) f32         fc bias tile
    out_ref : VMEM (B, TN) f32         logits tile
    avg_sc  : VMEM (B, E) f32 scratch  window-mean embeddings
    """
    B, W = ctx_ref.shape
    E = emb_ref.shape[1]
    inv_w = jnp.float32(1.0 / W)

    # Gather + mean over the context window, one batch row at a time,
    # accumulated straight into VMEM scratch (no concatenate, no unrolled B*W).
    @pl.loop(0, B)
    def _(b):
        def add_row(w, acc):
            idx = ctx_ref[b, w]                       # scalar read from SMEM
            return acc + emb_ref[pl.ds(idx, 1), :]    # (1, E) dynamic row gather
        acc = lax.fori_loop(0, W, add_row,
                            jnp.zeros((1, E), jnp.float32), unroll=True)
        avg_sc[pl.ds(b, 1), :] = acc * inv_w

    # (B, E) x (TN, E) contracted on E -> (B, TN) on the MXU, f32 accumulation.
    out_ref[...] = (
        lax.dot_general(
            avg_sc[...], w_ref[...],
            dimension_numbers=(((1,), (1,)), ((), ())),
            preferred_element_type=jnp.float32,
        )
        + b_ref[...]
    )


def cbow_forward(context, emb_weights, fc_weight, fc_bias, *, tn=None):
    """context: (B, W) int; emb_weights: (V, E); fc_weight: (V, E); fc_bias: (V,)."""
    B, W = context.shape
    V, E = emb_weights.shape

    # Lane-dense output tiles: multiple of 128, up to 512.
    v_pad = ((V + 127) // 128) * 128
    if tn is None:
        tn = min(512, v_pad)
    v_pad = ((v_pad + tn - 1) // tn) * tn

    if v_pad != V:
        fc_weight = jnp.zeros((v_pad, E), fc_weight.dtype).at[:V, :].set(fc_weight)
        fc_bias = jnp.zeros((v_pad,), fc_bias.dtype).at[:V].set(fc_bias)
    bias2d = fc_bias.reshape(1, v_pad)

    out = pl.pallas_call(
        cbow_kernel,
        out_shape=jax.ShapeDtypeStruct((B, v_pad), jnp.float32),
        grid_spec=pltpu.PrefetchScalarGridSpec(
            num_scalar_prefetch=1,                     # context ids -> SMEM
            grid=(v_pad // tn,),
            in_specs=[
                # Embedding table: same block every grid step -> DMA'd once,
                # stays resident in VMEM.
                # TODO(synk): for vocab-scale tables on v7x (64 MiB VMEM), move
                # the table to memory_space=pl.ANY and DMA-gather rows instead.
                pl.BlockSpec((V, E), lambda j, ctx: (0, 0)),
                # fc weight tile (TN, E): pipelined over the vocab grid.
                pl.BlockSpec((tn, E), lambda j, ctx: (j, 0)),
                # fc bias tile (1, TN).
                pl.BlockSpec((1, tn), lambda j, ctx: (0, j)),
            ],
            out_specs=pl.BlockSpec((B, tn), lambda j, ctx: (0, j)),
            scratch_shapes=[pltpu.VMEM((B, E), jnp.float32)],
        ),
        compiler_params=pltpu.CompilerParams(
            dimension_semantics=("parallel",),          # megacore-shard on v7x
            vmem_limit_bytes=64 * 1024 * 1024,
        ),
    )(context.astype(jnp.int32), emb_weights, fc_weight, bias2d)

    return out[:, :V]


def cbow_reference(context, emb_weights, fc_weight, fc_bias):
    ctx_vecs = emb_weights[context]           # (B, W, E)
    avg = ctx_vecs.mean(axis=1)               # (B, E)
    return avg @ fc_weight.T + fc_bias        # (B, V)


if __name__ == "__main__":
    # Small, deterministic synthetic configuration (no checkpoint load).
    vocab_size = 64
    embedding_dim = 32
    winlen = 4
    batch = 8

    key = jax.random.PRNGKey(0)
    k_emb, k_w, k_b, k_ctx = jax.random.split(key, 4)

    # nn.Parameter(torch.randn(V, E) * (1 / sqrt(E)))
    emb_weights = (
        jax.random.normal(k_emb, (vocab_size, embedding_dim), jnp.float32)
        * (1.0 / embedding_dim**0.5)
    )
    # nn.Linear(E, V): weight (V, E), bias (V,) -- deterministic uniform init
    bound = 1.0 / embedding_dim**0.5
    fc_weight = jax.random.uniform(
        k_w, (vocab_size, embedding_dim), jnp.float32, -bound, bound
    )
    fc_bias = jax.random.uniform(k_b, (vocab_size,), jnp.float32, -bound, bound)

    context = jax.random.randint(k_ctx, (batch, winlen), 0, vocab_size, jnp.int32)

    out = cbow_forward(context, emb_weights, fc_weight, fc_bias)
    out = jax.block_until_ready(out)

    ref = cbow_reference(context, emb_weights, fc_weight, fc_bias)
    assert out.shape == (batch, vocab_size)
    assert jnp.allclose(out, ref, atol=1e-5, rtol=1e-5), "mismatch vs reference"

    print("KERNEL_OK")
</pallas_src>

<mosaic_0001>
module attributes {stable_mosaic.version = 11 : i64} {
  func.func @cbow_kernel(%arg0: i32, %arg1: memref<8x4xi32, #tpu.memory_space<smem>>, %arg2: memref<64x32xf32, #tpu.memory_space<vmem>>, %arg3: memref<128x32xf32, #tpu.memory_space<vmem>>, %arg4: memref<1x128xf32, #tpu.memory_space<vmem>>, %arg5: memref<8x128xf32, #tpu.memory_space<vmem>>, %arg6: memref<8x32xf32, #tpu.memory_space<vmem>>) attributes {dimension_semantics = [#tpu.dimension_semantics<parallel>], iteration_bounds = array<i64: 1>, scalar_prefetch = 1 : i64, scratch_operands = 1 : i64, tpu.core_type = #tpu.core_type<tc>, window_params = [{pipeline_mode = #tpu.pipeline_mode<synchronous>, transform_indices = @transform_0, window_bounds = array<i64: 64, 32>}, {transform_indices = @transform_1, window_bounds = array<i64: 128, 32>}, {transform_indices = @transform_2, window_bounds = array<i64: 1, 128>}, {transform_indices = @transform_3, window_bounds = array<i64: 8, 128>}]} {
    %cst = arith.constant 2.500000e-01 : f32
    %c0_i32 = arith.constant 0 : i32
    %c8_i32 = arith.constant 8 : i32
    %0 = arith.addi %c0_i32, %c8_i32 : i32
    %c1_i32 = arith.constant 1 : i32
    scf.for %arg7 = %c0_i32 to %0 step %c1_i32  : i32 {
      %c1_i32_9 = arith.constant 1 : i32
      %8 = arith.muli %arg7, %c1_i32_9 : i32
      %c0_i32_10 = arith.constant 0 : i32
      %9 = arith.addi %c0_i32_10, %8 : i32
      %cst_11 = arith.constant 0.000000e+00 : f32
      %10 = vector.broadcast %cst_11 : f32 to vector<1x32xf32>
      %c0_i32_12 = arith.constant 0 : i32
      %11 = arith.index_cast %9 : i32 to index
      %12 = arith.index_cast %c0_i32_12 : i32 to index
      %13 = memref.load %arg1[%11, %12] : memref<8x4xi32, #tpu.memory_space<smem>>
      %14 = arith.index_cast %13 : i32 to index
      %c0_13 = arith.constant 0 : index
      %15 = vector.load %arg2[%14, %c0_13] : memref<64x32xf32, #tpu.memory_space<vmem>>, vector<1x32xf32>
      %16 = arith.addf %10, %15 : vector<1x32xf32>
      %c1_i32_14 = arith.constant 1 : i32
      %17 = arith.index_cast %9 : i32 to index
      %18 = arith.index_cast %c1_i32_14 : i32 to index
      %19 = memref.load %arg1[%17, %18] : memref<8x4xi32, #tpu.memory_space<smem>>
      %20 = arith.index_cast %19 : i32 to index
      %c0_15 = arith.constant 0 : index
      %21 = vector.load %arg2[%20, %c0_15] : memref<64x32xf32, #tpu.memory_space<vmem>>, vector<1x32xf32>
      %22 = arith.addf %16, %21 : vector<1x32xf32>
      %c2_i32 = arith.constant 2 : i32
      %23 = arith.index_cast %9 : i32 to index
      %24 = arith.index_cast %c2_i32 : i32 to index
      %25 = memref.load %arg1[%23, %24] : memref<8x4xi32, #tpu.memory_space<smem>>
      %26 = arith.index_cast %25 : i32 to index
      %c0_16 = arith.constant 0 : index
      %27 = vector.load %arg2[%26, %c0_16] : memref<64x32xf32, #tpu.memory_space<vmem>>, vector<1x32xf32>
      %28 = arith.addf %22, %27 : vector<1x32xf32>
      %c3_i32 = arith.constant 3 : i32
      %29 = arith.index_cast %9 : i32 to index
      %30 = arith.index_cast %c3_i32 : i32 to index
      %31 = memref.load %arg1[%29, %30] : memref<8x4xi32, #tpu.memory_space<smem>>
      %32 = arith.index_cast %31 : i32 to index
      %c0_17 = arith.constant 0 : index
      %33 = vector.load %arg2[%32, %c0_17] : memref<64x32xf32, #tpu.memory_space<vmem>>, vector<1x32xf32>
      %34 = arith.addf %28, %33 : vector<1x32xf32>
      %c4_i32 = arith.constant 4 : i32
      %35 = vector.broadcast %cst : f32 to vector<1x32xf32>
      %36 = arith.mulf %34, %35 : vector<1x32xf32>
      %37 = arith.index_cast %9 : i32 to index
      %c0_18 = arith.constant 0 : index
      %38 = vector.load %arg6[%37, %c0_18] : memref<8x32xf32, #tpu.memory_space<vmem>>, vector<1x32xf32>
      tpu.vector_store %arg6[%37, %c0_18], %36 {strides = array<i32>} : memref<8x32xf32, #tpu.memory_space<vmem>>, vector<1x32xf32>,
    }
    %c8_i32_0 = arith.constant 8 : i32
    %c0 = arith.constant 0 : index
    %c0_1 = arith.constant 0 : index
    %1 = vector.load %arg6[%c0, %c0_1] : memref<8x32xf32, #tpu.memory_space<vmem>>, vector<8x32xf32>
    %c0_2 = arith.constant 0 : index
    %c0_3 = arith.constant 0 : index
    %2 = vector.load %arg3[%c0_2, %c0_3] : memref<128x32xf32, #tpu.memory_space<vmem>>, vector<128x32xf32>
    %cst_4 = arith.constant dense<0.000000e+00> : vector<8x128xf32>
    %3 = tpu.matmul %1, %2, %cst_4 {dimension_numbers = #tpu.dot_dimension_numbers<[1], [1], [0], [0], [0, 0, 1, 0], [], []>} : vector<8x32xf32>, vector<128x32xf32>, vector<8x128xf32> -> vector<8x128xf32>
    %c0_5 = arith.constant 0 : index
    %c0_6 = arith.constant 0 : index
    %4 = vector.load %arg4[%c0_5, %c0_6] : memref<1x128xf32, #tpu.memory_space<vmem>>, vector<1x128xf32>
    %5 = vector.broadcast %4 : vector<1x128xf32> to vector<8x128xf32>
    %6 = arith.addf %3, %5 : vector<8x128xf32>
    %c0_7 = arith.constant 0 : index
    %c0_8 = arith.constant 0 : index
    %7 = vector.load %arg5[%c0_7, %c0_8] : memref<8x128xf32, #tpu.memory_space<vmem>>, vector<8x128xf32>
    tpu.vector_store %arg5[%c0_7, %c0_8], %6 {strides = array<i32>} : memref<8x128xf32, #tpu.memory_space<vmem>>, vector<8x128xf32>,
    return
  }
  func.func @transform_0(%arg0: i32, %arg1: memref<8x4xi32, #tpu.memory_space<smem>>) -> (i32, i32) {
    %c0_i32 = arith.constant 0 : i32
    %c0_i32_0 = arith.constant 0 : i32
    %c0_i32_1 = arith.constant 0 : i32
    return %c0_i32, %c0_i32_0 : i32, i32
  }
  func.func @transform_1(%arg0: i32, %arg1: memref<8x4xi32, #tpu.memory_space<smem>>) -> (i32, i32) {
    %c0_i32 = arith.constant 0 : i32
    %c0_i32_0 = arith.constant 0 : i32
    return %arg0, %c0_i32 : i32, i32
  }
  func.func @transform_2(%arg0: i32, %arg1: memref<8x4xi32, #tpu.memory_space<smem>>) -> (i32, i32) {
    %c0_i32 = arith.constant 0 : i32
    %c0_i32_0 = arith.constant 0 : i32
    return %c0_i32, %arg0 : i32, i32
  }
  func.func @transform_3(%arg0: i32, %arg1: memref<8x4xi32, #tpu.memory_space<smem>>) -> (i32, i32) {
    %c0_i32 = arith.constant 0 : i32
    %c0_i32_0 = arith.constant 0 : i32
    return %c0_i32, %arg0 : i32, i32
  }
}

</mosaic_0001>

<bundles_post_ra>
// kernel: tpu_custom_call.1
= control target key start
LH: loop header
LB: loop body
LE: loop exit
PB: predicated region body
PF: predicated region fallthrough
CT: control target
= control target key end

     0   :  { %s251_s18 = smov [#allocation4]   ;;  %s369_s0 = inlined_call_operand.vmem [shape: s32[8,4], index: 0, kind: input, shape index: {}]   ;;  %s370_s1 = inlined_call_operand.vmem [shape: f32[64,32], index: 1, kind: input, shape index: {}]   ;;  %s371_s2 = inlined_call_operand.vmem [shape: f32[128,32], index: 2, kind: input, shape index: {}]   ;;  %s372_s3 = inlined_call_operand.vmem [shape: f32[1,128], index: 3, kind: input, shape index: {}]   ;;  %s373_s4 = inlined_call_operand.hbm [shape: f32[8,128], index: 4, kind: output, shape index: {}]  }
   0x1   :  { %s10_s17 = sshll.u32 %s369_s0, 4  ;;  %s11_s17 = int_to_ptr.vmem [resolvable:$true] %s10_s17 }
   0x2   :  { %13 = dma.vmem_to_smem %s11_s17, 128, %s251_s18, [#allocation3] }
   0x3   :  { %243 = dma.done.wait [#allocation3], 128 }
   0x4   :  { %244 = vsyncadd [#allocation3], 4294967168 }
   0x5   :  { %16 = sfence }
   0x6   :  { %17 = vsyncpa [#allocation6], 0  ;;  %s281_s19 = smov 0  }
   0x7 LB: > { %s174_s20 = sshll.u32 %s249_s19, 7  ;;  %vm52_vm0 = vcmask 253952   ;;  %s51_s13 = scalar_lea.vmem [#allocation2], %s249_s19  ;;  %s249_s19 = sphi %s281_s19, %s29_s19  }
   0x8   : > { %s31_s21 = sld [smem:[#allocation4 + %s174_s20]]  ;;  %s35_s22 = sadd.s32 1, %s174_s20 }
   0x9   : > { %s36_s23 = sld [smem:[#allocation4 + %s35_s22]]  ;;  %s40_s24 = sadd.s32 2, %s174_s20 }
   0xa   : > { %s41_s25 = sld [smem:[#allocation4 + %s40_s24]]  ;;  %s45_s0 = sadd.s32 3, %s174_s20 }
   0xb   : > { %s46_s26 = sld [smem:[#allocation4 + %s45_s0]]  ;;  %s29_s19 = sadd.s32 1, %s249_s19  }
   0xc   : > { %p26_p0 = scmp.ge.s32.totalorder %s29_s19, 8  }
   0xd   :  { %v70_v8 = vld [vmem:[%s371_s2 + $0x78] sm:$0xff] (%p26_p0)  ;;  %vm75_vm1 = vcmask (%p26_p0), 261120   ;;  %v69_v9 = vld [vmem:[%s371_s2 + $0x70] sm:$0xff] (%p26_p0)  ;;  %v68_v10 = vld [vmem:[%s371_s2 + $0x68] sm:$0xff] (%p26_p0)  ;;  %s252_s19 = smov (%p26_p0), [#allocation5]  }
   0xe   : > { %s32_s29 = scalar_lea.vmem %s370_s1, %s31_s21  ;;  %175 = vmatpush.xpose.msk.msra.mxu0 (%p26_p0), %vm75_vm1, %v70_v8  ;;  %v67_v11 = vld [vmem:[%s371_s2 + $0x60] sm:$0xff] (%p26_p0)  ;;  %v66_v12 = vld [vmem:[%s371_s2 + $0x58] sm:$0xff] (%p26_p0)  ;;  %v65_v13 = vld [vmem:[%s371_s2 + $0x50] sm:$0xff] (%p26_p0) }
   0xf   : > { %v33_v0 = vld [vmem:[%s32_s29] sm:$0x1]  ;;  %s37_s6 = scalar_lea.vmem %s370_s1, %s36_s23  ;;  %v64_v14 = vld [vmem:[%s371_s2 + $0x48] sm:$0xff] (%p26_p0)  ;;  %v62_v16 = vld [vmem:[%s371_s2 + $0x38] sm:$0xff] (%p26_p0)  ;;  %s155_s23 = sshll.u32 (%p26_p0), %s373_s4, 4  ;;  %s156_s23 = int_to_ptr.hbm [resolvable:$true] %s155_s23 }
  0x10   : > { %v38_v1 = vld [vmem:[%s37_s6] sm:$0x1]  ;;  %s42_s9 = scalar_lea.vmem %s370_s1, %s41_s25  ;;  %v61_v17 = vld [vmem:[%s371_s2 + $0x30] sm:$0xff] (%p26_p0)  ;;  %v60_v18 = vld [vmem:[%s371_s2 + $0x28] sm:$0xff] (%p26_p0) }
  0x11   : > { %v39_v2 = vadd.f32 %v38_v1, %v33_v0  ;;  %v43_v3 = vld [vmem:[%s42_s9] sm:$0x1]  ;;  %s47_s12 = scalar_lea.vmem %s370_s1, %s46_s26  ;;  %v58_v20 = vld [vmem:[%s371_s2 + $0x18] sm:$0xff] (%p26_p0)  ;;  %v57_v21 = vld [vmem:[%s371_s2 + $0x10] sm:$0xff] (%p26_p0)  ;;  %s153_s1 = sshll.u32 (%p26_p0), %s252_s19, 4  ;;  %s154_s1 = int_to_ptr.vmem [resolvable:$true] %s153_s1 }
  0x12   : > { %v48_v4 = vld [vmem:[%s47_s12] sm:$0x1]  ;;  %176 = vmatpush.xpose.msk.msra.mxu0 (%p26_p0), %vm75_vm1, %v69_v9  ;;  %v56_v22 = vld [vmem:[%s371_s2 + $0x8] sm:$0xff] (%p26_p0) }
  0x13   : > { %v44_v5 = vadd.f32 %v43_v3, %v39_v2  ;;  %v63_v15 = vld [vmem:[%s371_s2 + $0x40] sm:$0xff] (%p26_p0) }
  0x14   :  { %v59_v19 = vld [vmem:[%s371_s2 + $0x20] sm:$0xff] (%p26_p0) }
  0x15   : > { %v49_v6 = vadd.f32 %v48_v4, %v44_v5  ;;  %28 = sbr.rel (!%p26_p0) target bundleno = 7 (0x7), region = 44  ;;  %v55_v23 = vld [vmem:[%s371_s2] sm:$0xff] (%p26_p0) }
  0x16   :  { %177 = vmatpush.xpose.msk.msra.mxu0 (%p26_p0), %vm75_vm1, %v68_v10  ;;  %v202_v25 = vld [vmem:[%s372_s3] ss:$0 sm:$0xff] (%p26_p0) }
  0x17   : > { %v50_v7 = vmul.f32 0.25, %v49_v6 }
  0x19   : > { %53 = vst.msk [vmem:[%s51_s13] sm:$0x1] %vm52_vm0, %v50_v7 }
  0x1a   :  { %178 = vmatpush.xpose.msk.msra.mxu0 %vm75_vm1, %v67_v11 }
  0x1e   :  { %179 = vmatpush.xpose.msk.msra.mxu0 %vm75_vm1, %v66_v12 }
  0x20   :  { %v54_v24 = vld [vmem:[#allocation2] sm:$0xff] }
  0x22   :  { %180 = vmatpush.xpose.msk.msra.mxu0 %vm75_vm1, %v65_v13 }
  0x26   :  { %181 = vmatpush.xpose.msk.msra.mxu0 %vm75_vm1, %v64_v14 }
  0x2a   :  { %182 = vmatpush.xpose.msk.msra.mxu0 %vm75_vm1, %v63_v15 }
  0x2e   :  { %183 = vmatpush.xpose.msk.msra.mxu0 %vm75_vm1, %v62_v16 }
  0x32   :  { %184 = vmatpush.xpose.msk.msra.mxu0 %vm75_vm1, %v61_v17 }
  0x36   :  { %185 = vmatpush.xpose.msk.msra.mxu0 %vm75_vm1, %v60_v18 }
  0x3a   :  { %186 = vmatpush.xpose.msk.msra.mxu0 %vm75_vm1, %v59_v19 }
  0x3e   :  { %187 = vmatpush.xpose.msk.msra.mxu0 %vm75_vm1, %v58_v20 }
  0x42   :  { %188 = vmatpush.xpose.msk.msra.mxu0 %vm75_vm1, %v57_v21 }
  0x46   :  { %189 = vmatpush.xpose.msk.msra.mxu0 %vm75_vm1, %v56_v22 }
  0x4a   :  { %190 = vmatpush.xpose.msk.msra.mxu0 %vm75_vm1, %v55_v23 }
  0x4d   :  { %191 = vmatmul.msk.f32.vlgmr.msra.gmra.mxu0 %vm75_vm1, %v54_v24 }
  0xca   :  { %v144_v26 = vpop.f32.mrf.mxu0 }
  0xcb   :  { %v145_v27 = vadd.f32 %v202_v25, %v144_v26 }
  0xcd   :  { %147 = vst [vmem:[#allocation5] sm:$0xff] %v145_v27 }
  0xce   :  { %158 = dma.vmem_to_hbm [thread:$0]  %s154_s1, 128, %s156_s23, [#allocation6]  }
  0xcf   :  { %245 = dma.done.wait [#allocation6], 128  }
  0xd0   :  { %246 = vsyncadd [#allocation6], 4294967168 }
  0xd1   :  { %163 = vsyncpa [#allocation6], 1 }

</bundles_post_ra>
